<compile_context>
chip_gen: v6e
topology: v6e:2x2x1
jax: 0.10.0
libtpu: 0.0.40
codegen_flags: <defaults>
</compile_context>

<pallas_src>
import functools

import jax
import jax.numpy as jnp
from jax import lax
from jax.experimental import pallas as pl
from jax.experimental.pallas import tpu as pltpu

LANES = 128       # TPU vreg lane width
SUBLANES = 8      # TPU vreg sublane height (f32)
NEG_INF = -1e30   # finite "-inf" for masked padded logit lanes


def _round_up(n, m):
    return (n + m - 1) // m * m


def _choose_tile(batch, block_b):
    """Pick a sublane-aligned batch tile.

    Goals: little padding waste, big enough tiles to amortize the ~0.35 us
    per-grid-step overhead, and >= 2 (even number of) tiles whenever the batch
    allows so v7x's two TensorCores both get work.
    """
    b_min = _round_up(max(batch, 1), SUBLANES)
    n_tiles = max(1, -(-b_min // block_b))          # ceil-div
    if b_min >= 2 * SUBLANES:
        n_tiles = max(n_tiles, 2)                   # let both v7x TCs work
        if n_tiles % 2:
            n_tiles += 1                            # even split, no ragged tail
    tb = _round_up(-(-b_min // n_tiles), SUBLANES)
    b_p = _round_up(b_min, tb)
    return tb, b_p


def _degreenet_kernel(x_ref, w1_ref, b1_ref, w2_ref, b2_ref, out_ref, *, nout):
    # --- lin1 + relu: bf16 MXU inputs (cast in-kernel), f32 accumulate -------
    x = x_ref[...].astype(jnp.bfloat16)
    h = jnp.dot(x, w1_ref[...], preferred_element_type=jnp.float32)
    h = jnp.maximum(h + b1_ref[...], 0.0)

    # --- lin2 + relu (padded hidden lanes are exactly 0 -> contribute 0) -----
    o = jnp.dot(h.astype(jnp.bfloat16), w2_ref[...],
                preferred_element_type=jnp.float32)
    o = jnp.maximum(o + b2_ref[...], 0.0)

    # Mask padded logit lanes AFTER ReLU so they don't perturb the normalizer.
    lane = lax.broadcasted_iota(jnp.int32, o.shape, 1)
    o = jnp.where(lane < nout, o, NEG_INF)

    # --- numerically stable log_softmax over the last dim --------------------
    m = jnp.max(o, axis=-1, keepdims=True)                        # XLU
    s = o - m
    lse = jnp.log(jnp.sum(jnp.exp(s), axis=-1, keepdims=True))    # EUP + XLU

    # Store only the real nout lanes (output HBM array is (b_p, nout)).
    out_ref[...] = (s - lse)[:, :nout].astype(out_ref.dtype)


def prepare_params(w1, b1, w2, b2):
    """One-time weight prep, hoisted out of the per-call forward path.

    Transposes to (in, out) layout, zero-pads the hidden/output feature dims
    to 128 lanes, and casts the MXU operands to bf16.  The contraction dim of
    the first matmul is left at nin (no lane padding needed on the K dim).
    """
    nhidden, nin = w1.shape
    nout = w2.shape[0]
    nhid_p = _round_up(nhidden, LANES)
    nout_p = _round_up(nout, LANES)

    w1_p = jnp.zeros((nin, nhid_p), jnp.bfloat16).at[:, :nhidden].set(
        w1.T.astype(jnp.bfloat16))
    b1_p = jnp.zeros((1, nhid_p), jnp.float32).at[0, :nhidden].set(
        b1.astype(jnp.float32))
    w2_p = jnp.zeros((nhid_p, nout_p), jnp.bfloat16).at[:nhidden, :nout].set(
        w2.T.astype(jnp.bfloat16))
    b2_p = jnp.zeros((1, nout_p), jnp.float32).at[0, :nout].set(
        b2.astype(jnp.float32))
    return w1_p, b1_p, w2_p, b2_p, nout


@functools.partial(jax.jit, static_argnames=("nout", "block_b"))
def degreenet_forward(x, w1_p, b1_p, w2_p, b2_p, *, nout, block_b=2048):
    """DegreeNet forward: log_softmax(relu(relu(x @ w1.T + b1) @ w2.T + b2)).

    x    : (B, nin) float        (unpadded; bf16 cast happens in-kernel)
    w1_p : (nin, nhid_p) bf16    from prepare_params
    b1_p : (1, nhid_p)   f32
    w2_p : (nhid_p, nout_p) bf16
    b2_p : (1, nout_p)   f32
    returns (B, nout) float32 log-probabilities.
    """
    B, nin = x.shape
    nhid_p = w1_p.shape[1]
    nout_p = w2_p.shape[1]

    tb, b_p = _choose_tile(B, block_b)

    # Batch-pad only (no lane pad, no dtype change) when required.
    if b_p != B:
        x_in = jnp.zeros((b_p, nin), x.dtype).at[:B].set(x)
    else:
        x_in = x

    grid = (b_p // tb,)

    cost = pl.CostEstimate(
        flops=2 * b_p * (nin * nhid_p + nhid_p * nout_p),
        transcendentals=b_p * (nout_p + 1),
        bytes_accessed=(x_in.size * x_in.dtype.itemsize   # x stream
                        + w1_p.size * 2 + w2_p.size * 2   # resident bf16 weights
                        + (b1_p.size + b2_p.size) * 4     # resident f32 biases
                        + b_p * nout * 4),                # slim f32 output
    )

    out_p = pl.pallas_call(
        functools.partial(_degreenet_kernel, nout=nout),
        out_shape=jax.ShapeDtypeStruct((b_p, nout), jnp.float32),
        grid=grid,
        in_specs=[
            pl.BlockSpec((tb, nin), lambda i: (i, 0)),         # x tile, pipelined
            pl.BlockSpec((nin, nhid_p), lambda i: (0, 0)),     # VMEM-resident W1
            pl.BlockSpec((1, nhid_p), lambda i: (0, 0)),       # resident b1
            pl.BlockSpec((nhid_p, nout_p), lambda i: (0, 0)),  # resident W2
            pl.BlockSpec((1, nout_p), lambda i: (0, 0)),       # resident b2
        ],
        out_specs=pl.BlockSpec((tb, nout), lambda i: (i, 0)),  # only real lanes
        compiler_params=pltpu.CompilerParams(
            dimension_semantics=("parallel",),
        ),
        cost_estimate=cost,
    )(x_in, w1_p, b1_p, w2_p, b2_p)

    # Slice away batch padding only (lane padding never reaches HBM).
    return out_p if b_p == B else out_p[:B]


def init_linear_params(key, in_features, out_features):
    """nn.Linear-style init: U(-1/sqrt(fan_in), 1/sqrt(fan_in)), torch layout."""
    kw, kb = jax.random.split(key)
    bound = 1.0 / (in_features ** 0.5)
    w = jax.random.uniform(kw, (out_features, in_features), jnp.float32,
                           minval=-bound, maxval=bound)
    b = jax.random.uniform(kb, (out_features,), jnp.float32,
                           minval=-bound, maxval=bound)
    return w, b


def reference_forward(x, w1, b1, w2, b2):
    h = jnp.maximum(x @ w1.T + b1, 0.0)
    o = jnp.maximum(h @ w2.T + b2, 0.0)
    return jax.nn.log_softmax(o, axis=-1)


if __name__ == "__main__":
    key = jax.random.PRNGKey(0)
    k_x, k_l1, k_l2 = jax.random.split(key, 3)

    batch, nin, nhidden, nout = 8, 16, 32, 8

    x = jax.random.normal(k_x, (batch, nin), jnp.float32)
    w1, b1 = init_linear_params(k_l1, nin, nhidden)
    w2, b2 = init_linear_params(k_l2, nhidden, nout)

    # One-time parameter prep (hoisted out of the per-call forward path).
    w1_p, b1_p, w2_p, b2_p, nout_real = prepare_params(w1, b1, w2, b2)

    out = degreenet_forward(x, w1_p, b1_p, w2_p, b2_p, nout=nout_real)
    out = jax.block_until_ready(out)

    ref = reference_forward(x, w1, b1, w2, b2)
    assert out.shape == (batch, nout), out.shape
    assert jnp.all(jnp.isfinite(out)), "non-finite values in output"
    # bf16 MXU inputs -> slightly looser tolerance than a pure-f32 version.
    assert jnp.allclose(out, ref, atol=2e-2, rtol=0.0), \
        f"mismatch vs reference: max abs err {float(jnp.max(jnp.abs(out - ref)))}"

    print("KERNEL_OK")
</pallas_src>

<mosaic_0001>
module attributes {stable_mosaic.version = 11 : i64} {
  func.func @_degreenet_kernel(%arg0: i32, %arg1: memref<8x16xf32, #tpu.memory_space<vmem>>, %arg2: memref<16x128xbf16, #tpu.memory_space<vmem>>, %arg3: memref<1x128xf32, #tpu.memory_space<vmem>>, %arg4: memref<128x128xbf16, #tpu.memory_space<vmem>>, %arg5: memref<1x128xf32, #tpu.memory_space<vmem>>, %arg6: memref<8x8xf32, #tpu.memory_space<vmem>>) attributes {dimension_semantics = [#tpu.dimension_semantics<parallel>], iteration_bounds = array<i64: 1>, scalar_prefetch = 0 : i64, scratch_operands = 0 : i64, tpu.core_type = #tpu.core_type<tc>, window_params = [{transform_indices = @transform_0, window_bounds = array<i64: 8, 16>}, {pipeline_mode = #tpu.pipeline_mode<synchronous>, transform_indices = @transform_1, window_bounds = array<i64: 16, 128>}, {pipeline_mode = #tpu.pipeline_mode<synchronous>, transform_indices = @transform_2, window_bounds = array<i64: 1, 128>}, {pipeline_mode = #tpu.pipeline_mode<synchronous>, transform_indices = @transform_3, window_bounds = array<i64: 128, 128>}, {pipeline_mode = #tpu.pipeline_mode<synchronous>, transform_indices = @transform_4, window_bounds = array<i64: 1, 128>}, {transform_indices = @transform_5, window_bounds = array<i64: 8, 8>}]} {
    %c0 = arith.constant 0 : index
    %c0_0 = arith.constant 0 : index
    %0 = vector.load %arg1[%c0, %c0_0] : memref<8x16xf32, #tpu.memory_space<vmem>>, vector<8x16xf32>
    %1 = arith.truncf %0 : vector<8x16xf32> to vector<8x16xbf16>
    %c0_1 = arith.constant 0 : index
    %c0_2 = arith.constant 0 : index
    %2 = vector.load %arg2[%c0_1, %c0_2] : memref<16x128xbf16, #tpu.memory_space<vmem>>, vector<16x128xbf16>
    %cst = arith.constant dense<0.000000e+00> : vector<8x128xf32>
    %3 = tpu.matmul %1, %2, %cst {dimension_numbers = #tpu.dot_dimension_numbers<[1], [0], [0], [1], [0, 0, 1, 1], [], []>} : vector<8x16xbf16>, vector<16x128xbf16>, vector<8x128xf32> -> vector<8x128xf32>
    %c0_3 = arith.constant 0 : index
    %c0_4 = arith.constant 0 : index
    %4 = vector.load %arg3[%c0_3, %c0_4] : memref<1x128xf32, #tpu.memory_space<vmem>>, vector<1x128xf32>
    %5 = vector.broadcast %4 : vector<1x128xf32> to vector<8x128xf32>
    %6 = arith.addf %3, %5 : vector<8x128xf32>
    %cst_5 = arith.constant 0.000000e+00 : f32
    %7 = vector.broadcast %cst_5 : f32 to vector<8x128xf32>
    %8 = arith.maximumf %6, %7 : vector<8x128xf32>
    %9 = arith.truncf %8 : vector<8x128xf32> to vector<8x128xbf16>
    %c0_6 = arith.constant 0 : index
    %c0_7 = arith.constant 0 : index
    %10 = vector.load %arg4[%c0_6, %c0_7] : memref<128x128xbf16, #tpu.memory_space<vmem>>, vector<128x128xbf16>
    %cst_8 = arith.constant dense<0.000000e+00> : vector<8x128xf32>
    %11 = tpu.matmul %9, %10, %cst_8 {dimension_numbers = #tpu.dot_dimension_numbers<[1], [0], [0], [1], [0, 0, 1, 1], [], []>} : vector<8x128xbf16>, vector<128x128xbf16>, vector<8x128xf32> -> vector<8x128xf32>
    %c0_9 = arith.constant 0 : index
    %c0_10 = arith.constant 0 : index
    %12 = vector.load %arg5[%c0_9, %c0_10] : memref<1x128xf32, #tpu.memory_space<vmem>>, vector<1x128xf32>
    %13 = vector.broadcast %12 : vector<1x128xf32> to vector<8x128xf32>
    %14 = arith.addf %11, %13 : vector<8x128xf32>
    %cst_11 = arith.constant 0.000000e+00 : f32
    %15 = vector.broadcast %cst_11 : f32 to vector<8x128xf32>
    %16 = arith.maximumf %14, %15 : vector<8x128xf32>
    %17 = tpu.iota {dimensions = array<i32: 1>} : vector<8x128xi32>
    %c8_i32 = arith.constant 8 : i32
    %18 = vector.broadcast %c8_i32 : i32 to vector<8x128xi32>
    %19 = arith.cmpi slt, %17, %18 : vector<8x128xi32>
    %cst_12 = arith.constant -1.000000e+30 : f32
    %20 = vector.broadcast %cst_12 : f32 to vector<8x128xf32>
    %21 = arith.select %19, %16, %20 : vector<8x128xi1>, vector<8x128xf32>
    %cst_13 = arith.constant dense<0xFF800000> : vector<8xf32>
    %22 = vector.multi_reduction <maximumf>, %21, %cst_13 [1] : vector<8x128xf32> to vector<8xf32>
    %23 = vector.shape_cast %22 : vector<8xf32> to vector<8x1xf32>
    %24 = vector.broadcast %23 : vector<8x1xf32> to vector<8x128xf32>
    %25 = arith.subf %21, %24 : vector<8x128xf32>
    %26 = math.exp %25 : vector<8x128xf32>
    %cst_14 = arith.constant dense<0.000000e+00> : vector<8xf32>
    %27 = vector.multi_reduction <add>, %26, %cst_14 [1] : vector<8x128xf32> to vector<8xf32>
    %28 = vector.shape_cast %27 : vector<8xf32> to vector<8x1xf32>
    %29 = math.log %28 : vector<8x1xf32>
    %30 = vector.broadcast %29 : vector<8x1xf32> to vector<8x128xf32>
    %31 = arith.subf %25, %30 : vector<8x128xf32>
    %32 = vector.extract_strided_slice %31 {offsets = [0, 0], sizes = [8, 8], strides = [1, 1]} : vector<8x128xf32> to vector<8x8xf32>
    %c0_15 = arith.constant 0 : index
    %c0_16 = arith.constant 0 : index
    %33 = vector.load %arg6[%c0_15, %c0_16] : memref<8x8xf32, #tpu.memory_space<vmem>>, vector<8x8xf32>
    tpu.vector_store %arg6[%c0_15, %c0_16], %32 {strides = array<i32>} : memref<8x8xf32, #tpu.memory_space<vmem>>, vector<8x8xf32>,
    return
  }
  func.func @transform_0(%arg0: i32) -> (i32, i32) {
    %c0_i32 = arith.constant 0 : i32
    %c0_i32_0 = arith.constant 0 : i32
    return %arg0, %c0_i32 : i32, i32
  }
  func.func @transform_1(%arg0: i32) -> (i32, i32) {
    %c0_i32 = arith.constant 0 : i32
    %c0_i32_0 = arith.constant 0 : i32
    %c0_i32_1 = arith.constant 0 : i32
    return %c0_i32, %c0_i32_0 : i32, i32
  }
  func.func @transform_2(%arg0: i32) -> (i32, i32) {
    %c0_i32 = arith.constant 0 : i32
    %c0_i32_0 = arith.constant 0 : i32
    %c0_i32_1 = arith.constant 0 : i32
    return %c0_i32, %c0_i32_0 : i32, i32
  }
  func.func @transform_3(%arg0: i32) -> (i32, i32) {
    %c0_i32 = arith.constant 0 : i32
    %c0_i32_0 = arith.constant 0 : i32
    %c0_i32_1 = arith.constant 0 : i32
    return %c0_i32, %c0_i32_0 : i32, i32
  }
  func.func @transform_4(%arg0: i32) -> (i32, i32) {
    %c0_i32 = arith.constant 0 : i32
    %c0_i32_0 = arith.constant 0 : i32
    %c0_i32_1 = arith.constant 0 : i32
    return %c0_i32, %c0_i32_0 : i32, i32
  }
  func.func @transform_5(%arg0: i32) -> (i32, i32) {
    %c0_i32 = arith.constant 0 : i32
    %c0_i32_0 = arith.constant 0 : i32
    return %arg0, %c0_i32 : i32, i32
  }
}

</mosaic_0001>

<bundles_post_ra>
// kernel: degreenet_forward.1
= control target key start
LH: loop header
LB: loop body
LE: loop exit
PB: predicated region body
PF: predicated region fallthrough
CT: control target
= control target key end

     0   :  { %10 = vsyncpa [#allocation3], 0  ;;  %s480_s0 = inlined_call_operand.hbm [shape: f32[8,16], index: 0, kind: input, shape index: {}]   ;;  %s481_s1 = inlined_call_operand.hbm [shape: bf16[16,128], index: 1, kind: input, shape index: {}]   ;;  %s482_s2 = inlined_call_operand.vmem [shape: f32[1,128], index: 2, kind: input, shape index: {}]   ;;  %s483_s3 = inlined_call_operand.hbm [shape: bf16[128,128], index: 3, kind: input, shape index: {}]   ;;  %s484_s4 = inlined_call_operand.vmem [shape: f32[1,128], index: 4, kind: input, shape index: {}]   ;;  %s485_s5 = inlined_call_operand.hbm [shape: f32[8,8], index: 5, kind: output, shape index: {}]  }
   0x1   :  { %11 = vsyncpa [#allocation6], 0 }
   0x2   :  { %12 = vsyncpa [#allocation4], 0  ;;  %s424_s18 = smov [#allocation5]  }
   0x3   :  { %s28_s19 = sshll.u32 %s424_s18, 4  ;;  %s29_s19 = int_to_ptr.vmem [resolvable:$true] %s28_s19 }
   0x4   :  { %s346_s20 = scalar_lea.vmem %s29_s19, 128  ;;  %p351_p1 = scmp.lt.s32.totalorder %s29_s19, %s29_s19 }
   0x5   :  { %p347_p0 = scmp.ne.s32.totalorder %s29_s19, %s346_s20  ;;  %p352_p2 = scmp.lt.s32.totalorder %s346_s20, %s346_s20 }
   0x7   :  { %p353_p3 = por %p352_p2, %p351_p1 }
   0x9   :  { %p354_p4 = pnand %p353_p3, %p347_p0 }
   0xb   :  { %357 = shalt.err (!%p354_p4)
}
   0xc   :  { %s425_s21 = smov 64   ;;  %s426_s22 = smov 4  }
   0xd   :  { %34 = dma.hbm_to_vmem [thread:$0]  %s481_s1, 128, %s29_s19, [#allocation6], %s425_s21, %s425_s21, %s426_s22  }
   0xe   :  { %s427_s25 = smov [#allocation2]   ;;  %s428_s27 = smov [#allocation7]  }
   0xf   :  { %s19_s26 = sshll.u32 %s427_s25, 4  ;;  %s42_s28 = sshll.u32 %s428_s27, 4  ;;  %s20_s26 = int_to_ptr.vmem [resolvable:$true] %s19_s26  ;;  %s43_s28 = int_to_ptr.vmem [resolvable:$true] %s42_s28 }
  0x10   :  { %s366_s29 = scalar_lea.vmem %s20_s26, 128  ;;  %p371_p6 = scmp.lt.s32.totalorder %s20_s26, %s20_s26 }
  0x11   :  { %p367_p5 = scmp.ne.s32.totalorder %s20_s26, %s366_s29  ;;  %p372_p7 = scmp.lt.s32.totalorder %s366_s29, %s366_s29 }
  0x13   :  { %p373_p8 = por %p372_p7, %p371_p6 }
  0x15   :  { %p374_p9 = pnand %p373_p8, %p367_p5 }
  0x17   :  { %377 = shalt.err (!%p374_p9)
}
  0x18   :  { %22 = dma.hbm_to_vmem [thread:$0]  %s480_s0, 128, %s20_s26, [#allocation3]  }
  0x19   :  { %s386_s7 = scalar_lea.vmem %s43_s28, 1024  ;;  %p391_p11 = scmp.lt.s32.totalorder %s43_s28, %s43_s28 }
  0x1a   :  { %p387_p10 = scmp.ne.s32.totalorder %s43_s28, %s386_s7  ;;  %p392_p12 = scmp.lt.s32.totalorder %s386_s7, %s386_s7 }
  0x1c   :  { %p393_p13 = por %p392_p12, %p391_p11 }
  0x1e   :  { %p394_p0 = pnand %p393_p13, %p387_p10 }
  0x20   :  { %397 = shalt.err (!%p394_p0)
}
  0x21   :  { %48 = dma.hbm_to_vmem [thread:$0]  %s483_s3, 1024, %s43_s28, [#allocation6], %s425_s21, %s425_s21, %s426_s22  }
  0x22   :  { %418 = dma.done.wait [#allocation3], 128  }
  0x23   :  { %419 = vsyncadd [#allocation3], 4294967168 }
  0x24   :  { %420 = dma.done.wait [#allocation6], 1152  }
  0x25   :  { %421 = vsyncadd [#allocation6], 4294966144  ;;  %v429_v0 = vmov 0.0   ;;  %vm430_vm0 = vmmov 0   ;;  %v325_v1 = vld [vmem:[#allocation5] sm:$0xff]   ;;  %v61_v2 = vld [vmem:[#allocation2] sm:$0xff]  ;;  %v236_v20 = vlaneseq }
  0x26   :  { %291 = vmatprep.subr.bf16.mxu0 %v429_v0  ;;  %293 = vmatprep.mubr.msk.bf16.mxu0 %vm430_vm0, %v429_v0  ;;  %v62_v3 = vpack.c.bf16 %v61_v2, %v61_v2  ;;  %vm78_vm1 = vcmask 130048   ;;  %v326_v4 = vld [vmem:[#allocation7 + $0x38] sm:$0xff]   ;;  %v327_v5 = vld [vmem:[#allocation7 + $0x30] sm:$0xff]   ;;  %v328_v6 = vld [vmem:[#allocation7 + $0x28] sm:$0xff]   ;;  %vm250_vm3 = vcmask 64512  }
  0x27   :  { %297 = vmatprep.subr.bf16.mxu1 %v429_v0  ;;  %313 = vmatprep.mubr.msk.bf16.mxu1 %vm430_vm0, %v429_v0  ;;  %v329_v7 = vld [vmem:[#allocation7 + $0x20] sm:$0xff]   ;;  %v330_v8 = vld [vmem:[#allocation7 + $0x18] sm:$0xff]   ;;  %v331_v9 = vld [vmem:[#allocation7 + $0x10] sm:$0xff]   ;;  %v237_v22 = vand.u32 127, %v236_v20 }
  0x28   :  { %292 = vmatpush3.bf16.msra.mxu0 %v325_v1  ;;  %298 = vmatpush3.bf16.msra.mxu1 %v326_v4  ;;  %v332_v10 = vld [vmem:[#allocation7 + $0x8] sm:$0xff]   ;;  %v333_v11 = vld [vmem:[#allocation7] sm:$0xff]   ;;  %v268_v12 = vld [vmem:[%s482_s2] ss:$0 sm:$0xff]  ;;  %s431_s2 = smov [#allocation8]  }
  0x29   :  { %299 = vmatprep.subr.bf16.mxu1 %v429_v0  ;;  %v271_v21 = vld [vmem:[%s484_s4] ss:$0 sm:$0xff]  ;;  %vm238_vm2 = vcmp.lt.s32.totalorder %v237_v22, 8  ;;  %s258_s4 = sshll.u32 %s431_s2, 4  ;;  %s259_s4 = int_to_ptr.vmem [resolvable:$true] %s258_s4 }
  0x2a   :  { %s398_s11 = scalar_lea.vmem %s259_s4, 128  ;;  %p403_p2 = scmp.lt.s32.totalorder %s259_s4, %s259_s4 }
  0x2b   :  { %294 = vmatmul.mubr.msk.bf16.vlgmr.msra.gmra.mxu0 %vm78_vm1, %v62_v3  ;;  %p399_p1 = scmp.ne.s32.totalorder %s259_s4, %s398_s11  ;;  %p404_p3 = scmp.lt.s32.totalorder %s398_s11, %s398_s11 }
  0x2c   :  { %300 = vmatpush3.bf16.msra.mxu1 %v327_v5 }
  0x2d   :  { %301 = vmatprep.subr.bf16.mxu1 %v429_v0  ;;  %p405_p4 = por %p404_p3, %p403_p2 }
  0x2f   :  { %p406_p5 = pnand %p405_p4, %p399_p1 }
  0x30   :  { %302 = vmatpush3.bf16.msra.mxu1 %v328_v6 }
  0x31   :  { %303 = vmatprep.subr.bf16.mxu1 %v429_v0 }
  0x34   :  { %304 = vmatpush3.bf16.msra.mxu1 %v329_v7 }
  0x35   :  { %305 = vmatprep.subr.bf16.mxu1 %v429_v0 }
  0x38   :  { %306 = vmatpush3.bf16.msra.mxu1 %v330_v8 }
  0x39   :  { %307 = vmatprep.subr.bf16.mxu1 %v429_v0 }
  0x3c   :  { %308 = vmatpush3.bf16.msra.mxu1 %v331_v9 }
  0x3d   :  { %309 = vmatprep.subr.bf16.mxu1 %v429_v0 }
  0x40   :  { %310 = vmatpush3.bf16.msra.mxu1 %v332_v10 }
  0x41   :  { %311 = vmatprep.subr.bf16.mxu1 %v429_v0 }
  0x44   :  { %312 = vmatpush3.bf16.msra.mxu1 %v333_v11 }
  0xeb   :  { %v116_v13 = vpop.f32.mrf.mxu0 }
  0xec   :  { %v117_v14 = vadd.f32 %v268_v12, %v116_v13 }
  0xed   :  { %v295_v15 = vpop.f32.mrf.mxu0 }
  0xee   :  { %v122_v16 = vmax.f32 %v117_v14, 0.0 }
  0xef   :  { %v119_v17 = vpop.f32.mrf.mxu0 }
  0xf0   :  { %v123_v18 = vpack.c.bf16 %v122_v16, %v122_v16 }
  0xf1   :  { %v296_v19 = vpop.f32.mrf.mxu0 }
  0xf2   :  { %314 = vmatmul.mubr.bf16.vlgmr.msra.gmra.mxu1 %v123_v18 }
 0x1b2   :  { %v229_v23 = vpop.f32.mrf.mxu1 }
 0x1b3   :  { %v230_v24 = vadd.f32 %v271_v21, %v229_v23 }
 0x1b4   :  { %v315_v25 = vpop.f32.mrf.mxu1 }
 0x1b5   :  { %v235_v26 = vmax.f32 %v230_v24, 0.0 }
 0x1b6   :  { %v232_v27 = vpop.f32.mrf.mxu1 }
 0x1b7   :  { %v239_v28 = vsel %vm238_vm2, %v235_v26, -1e+30 }
 0x1b8   :  { %240 = vmax.xlane.f32.xlu0 %v239_v28  ;;  %v316_v29 = vpop.f32.mrf.mxu1 }
 0x241   :  { %v241_v30 = vpop.xlane.xlu0 %240 }
 0x242   :  { %v242_v31 = vsub.f32 %v239_v28, %v241_v30 }
 0x244   :  { %v243_v32 = vmul.f32 1.442695, %v242_v31 }
 0x246   :  { %334 = vpow2.f32 %v243_v32 }
 0x253   :  { %v335_v33 = vpop.eup %334 }
 0x254   :  { %245 = vadd.xlane.f32.xlu0 %v335_v33 }
 0x2dd   :  { %v246_v34 = vpop.xlane.xlu0 %245 }
 0x2de   :  { %336 = vlog2.f32 %v246_v34 }
 0x2eb   :  { %v337_v35 = vpop.eup %336 }
 0x2ec   :  { %v248_v36 = vmul.f32 0.6931472, %v337_v35 }
 0x2ee   :  { %v249_v37 = vsub.f32 %v242_v31, %v248_v36 }
 0x2f0   :  { %251 = vst.msk [vmem:[#allocation8] sm:$0xff] %vm250_vm3, %v249_v37 }
 0x2f1   :  { %409 = shalt.err (!%p406_p5)
}
 0x2f2   :  { %261 = dma.vmem_to_hbm [thread:$0]  %s259_s4, 128, %s485_s5, [#allocation4]  }
 0x2f3   :  { %422 = dma.done.wait [#allocation4], 128  }
 0x2f4   :  { %423 = vsyncadd [#allocation4], 4294967168 }
 0x2f5   :  { %265 = vsyncpa [#allocation3], 1 }
 0x2f6   :  { %266 = vsyncpa [#allocation6], 1 }
 0x2f7   :  { %267 = vsyncpa [#allocation4], 1 }

</bundles_post_ra>
